<compile_context>
chip_gen: v7x
topology: tpu7x:2x2x1
jax: 0.10.0
libtpu: 0.0.40
codegen_flags: <defaults>
</compile_context>

<pallas_src>
import functools

import jax
import jax.numpy as jnp
from jax.experimental import pallas as pl
from jax.experimental.pallas import tpu as pltpu


_VMEM_LIMIT = 48 * 1024 * 1024  # safe on v5e/v6e (128 MiB) and v7x (64 MiB physical)

# Tile candidates (largest first).
_M_TILES = (512, 256, 128, 64, 32, 16, 8)      # second-minor (sublane) dims
_N_TILES = (512, 256, 128)                     # minor (lane) output dims
_K_TILES = (512, 256, 128)                     # contraction dims
_TQ_TILES = (256, 128, 64, 32, 16, 8)          # flash q tile
_TKV_TILES = (512, 256, 128, 64, 32, 16, 8)    # flash kv tile


def _pick_tile(dim, candidates, unit):
    """Largest candidate dividing `dim`; else largest divisor that is a multiple
    of the hardware unit; else the full dim (legal as a full-extent block)."""
    for c in candidates:
        if dim % c == 0:
            return c
    for d in range(min(dim, candidates[0]), unit - 1, -1):
        if dim % d == 0 and d % unit == 0:
            return d
    # TODO(synk): pad the array instead of a full-extent fallback for very large
    # dims that have no hardware-aligned divisor.
    return dim


# ----------------------------------------------------------------------------
# Kernel 1: generic lane-dense linear.
#   x: (B, L, Hin) @ w: (Hin, Hout) + b: (1, Hout) -> (B, L, Hout)
# Grid: (B, L//tm, Hout//tn, Hin//tk); contraction axis last.
# ----------------------------------------------------------------------------
def _linear_kernel(x_ref, w_ref, b_ref, o_ref, acc_ref):
    @pl.when(pl.program_id(3) == 0)
    def _init():
        acc_ref[...] = jnp.zeros_like(acc_ref)

    acc_ref[...] += jnp.dot(x_ref[0], w_ref[...],
                            preferred_element_type=jnp.float32)

    @pl.when(pl.program_id(3) == pl.num_programs(3) - 1)
    def _done():
        o_ref[0] = (acc_ref[...] + b_ref[...]).astype(o_ref.dtype)


def linear(x, w, bias, *, out_dtype):
    bsz, length, h_in = x.shape
    h_out = w.shape[1]
    tm = _pick_tile(length, _M_TILES, 8)
    tn = _pick_tile(h_out, _N_TILES, 128)
    tk = _pick_tile(h_in, _K_TILES, 128)
    grid = (bsz, length // tm, h_out // tn, h_in // tk)
    return pl.pallas_call(
        _linear_kernel,
        out_shape=jax.ShapeDtypeStruct((bsz, length, h_out), out_dtype),
        grid_spec=pltpu.PrefetchScalarGridSpec(
            num_scalar_prefetch=0,
            grid=grid,
            in_specs=[
                pl.BlockSpec((1, tm, tk), lambda bi, mi, ni, ki: (bi, mi, ki)),
                pl.BlockSpec((tk, tn), lambda bi, mi, ni, ki: (ki, ni)),
                pl.BlockSpec((1, tn), lambda bi, mi, ni, ki: (0, ni)),
            ],
            out_specs=pl.BlockSpec((1, tm, tn), lambda bi, mi, ni, ki: (bi, mi, ni)),
            scratch_shapes=[pltpu.VMEM((tm, tn), jnp.float32)],
        ),
        compiler_params=pltpu.CompilerParams(
            dimension_semantics=("parallel", "parallel", "parallel", "arbitrary"),
            vmem_limit_bytes=_VMEM_LIMIT),
    )(x, w, bias)


# ----------------------------------------------------------------------------
# Kernel 2: fused QKV projection for the self-attention path (q is k is v):
# the activation tile is read once and three matmuls share it.
# ----------------------------------------------------------------------------
def _fused_qkv_kernel(x_ref, wq_ref, wk_ref, wv_ref, bq_ref, bk_ref, bv_ref,
                      oq_ref, ok_ref, ov_ref, accq, acck, accv):
    @pl.when(pl.program_id(3) == 0)
    def _init():
        accq[...] = jnp.zeros_like(accq)
        acck[...] = jnp.zeros_like(acck)
        accv[...] = jnp.zeros_like(accv)

    x = x_ref[0]
    accq[...] += jnp.dot(x, wq_ref[...], preferred_element_type=jnp.float32)
    acck[...] += jnp.dot(x, wk_ref[...], preferred_element_type=jnp.float32)
    accv[...] += jnp.dot(x, wv_ref[...], preferred_element_type=jnp.float32)

    @pl.when(pl.program_id(3) == pl.num_programs(3) - 1)
    def _done():
        oq_ref[0] = (accq[...] + bq_ref[...]).astype(oq_ref.dtype)
        ok_ref[0] = (acck[...] + bk_ref[...]).astype(ok_ref.dtype)
        ov_ref[0] = (accv[...] + bv_ref[...]).astype(ov_ref.dtype)


def fused_qkv_projection(x, w_q, w_k, w_v, b_q, b_k, b_v):
    bsz, length, h_in = x.shape
    h_out = w_q.shape[1]
    tm = _pick_tile(length, _M_TILES, 8)
    tn = _pick_tile(h_out, _N_TILES, 128)
    tk = _pick_tile(h_in, _K_TILES, 128)
    grid = (bsz, length // tm, h_out // tn, h_in // tk)
    x_spec = pl.BlockSpec((1, tm, tk), lambda bi, mi, ni, ki: (bi, mi, ki))
    w_spec = pl.BlockSpec((tk, tn), lambda bi, mi, ni, ki: (ki, ni))
    b_spec = pl.BlockSpec((1, tn), lambda bi, mi, ni, ki: (0, ni))
    o_spec = pl.BlockSpec((1, tm, tn), lambda bi, mi, ni, ki: (bi, mi, ni))
    out_sds = jax.ShapeDtypeStruct((bsz, length, h_out), jnp.bfloat16)
    return pl.pallas_call(
        _fused_qkv_kernel,
        out_shape=(out_sds, out_sds, out_sds),
        grid_spec=pltpu.PrefetchScalarGridSpec(
            num_scalar_prefetch=0,
            grid=grid,
            in_specs=[x_spec, w_spec, w_spec, w_spec, b_spec, b_spec, b_spec],
            out_specs=(o_spec, o_spec, o_spec),
            scratch_shapes=[pltpu.VMEM((tm, tn), jnp.float32)] * 3,
        ),
        compiler_params=pltpu.CompilerParams(
            dimension_semantics=("parallel", "parallel", "parallel", "arbitrary"),
            vmem_limit_bytes=_VMEM_LIMIT),
    )(x, w_q, w_k, w_v, b_q, b_k, b_v)


# ----------------------------------------------------------------------------
# Kernel 3: flash-style attention, all heads per grid step, lane-dense I/O.
#   q: (B, Lq, H), k/v: (B, Lk, H) bf16 -> (B, Lq, H) bf16
# Grid: (B, Lq//tq, Lk//tkv); KV axis is the (last) reduction axis.
# The 1/sqrt(d_head) scale is already folded into the q projection weights.
# ----------------------------------------------------------------------------
def _flash_kernel(q_ref, k_ref, v_ref, o_ref, m_ref, l_ref, acc_ref,
                  *, n_head, d_head):
    ki = pl.program_id(2)

    @pl.when(ki == 0)
    def _init():
        m_ref[...] = jnp.full_like(m_ref, -jnp.inf)
        l_ref[...] = jnp.zeros_like(l_ref)
        acc_ref[...] = jnp.zeros_like(acc_ref)

    q = q_ref[0]     # (tq, H)  bf16
    k = k_ref[0]     # (tkv, H) bf16
    v = v_ref[0]     # (tkv, H) bf16

    for h in range(n_head):
        col = slice(h * d_head, (h + 1) * d_head)
        # q_h @ k_h^T without materializing a transpose (contract last dims).
        s = jax.lax.dot_general(
            q[:, col], k[:, col],
            dimension_numbers=(((1,), (1,)), ((), ())),
            preferred_element_type=jnp.float32)                    # (tq, tkv)
        m_prev = m_ref[h]                                          # (tq, 1)
        m_new = jnp.maximum(m_prev, jnp.max(s, axis=-1, keepdims=True))
        alpha = jnp.exp(m_prev - m_new)
        p = jnp.exp(s - m_new)                                     # f32 (portable incl. v5e)
        l_ref[h] = alpha * l_ref[h] + jnp.sum(p, axis=-1, keepdims=True)
        acc_ref[h] = alpha * acc_ref[h] + jnp.dot(
            p.astype(v.dtype), v[:, col], preferred_element_type=jnp.float32)
        m_ref[h] = m_new

    @pl.when(ki == pl.num_programs(2) - 1)
    def _done():
        # Exact reciprocal: runs once per q tile, effectively free.
        heads = [acc_ref[h] * (1.0 / l_ref[h]) for h in range(n_head)]
        o_ref[0] = jnp.concatenate(heads, axis=-1).astype(o_ref.dtype)


def flash_attention(q, k, v, *, n_head, d_head):
    bsz, lq, hidden = q.shape
    lk = k.shape[1]
    tq = _pick_tile(lq, _TQ_TILES, 8)
    tkv = _pick_tile(lk, _TKV_TILES, 8)
    kernel = functools.partial(_flash_kernel, n_head=n_head, d_head=d_head)
    grid = (bsz, lq // tq, lk // tkv)
    return pl.pallas_call(
        kernel,
        out_shape=jax.ShapeDtypeStruct((bsz, lq, hidden), jnp.bfloat16),
        grid_spec=pltpu.PrefetchScalarGridSpec(
            num_scalar_prefetch=0,
            grid=grid,
            in_specs=[
                pl.BlockSpec((1, tq, hidden), lambda bi, qi, ki: (bi, qi, 0)),
                pl.BlockSpec((1, tkv, hidden), lambda bi, qi, ki: (bi, ki, 0)),
                pl.BlockSpec((1, tkv, hidden), lambda bi, qi, ki: (bi, ki, 0)),
            ],
            out_specs=pl.BlockSpec((1, tq, hidden), lambda bi, qi, ki: (bi, qi, 0)),
            scratch_shapes=[
                pltpu.VMEM((n_head, tq, 1), jnp.float32),       # running max
                pltpu.VMEM((n_head, tq, 1), jnp.float32),       # running sum
                pltpu.VMEM((n_head, tq, d_head), jnp.float32),  # output accumulator
            ],
        ),
        compiler_params=pltpu.CompilerParams(
            dimension_semantics=("parallel", "parallel", "arbitrary"),
            vmem_limit_bytes=_VMEM_LIMIT),
    )(q, k, v)


# ----------------------------------------------------------------------------
# Full AttentionLayer forward.
# ----------------------------------------------------------------------------
def attention_layer_forward(params, q, k, v, mask=None):
    # TODO(synk): mask (masked_fill with -10000.0) not implemented; mask=None only.
    assert mask is None
    hidden = q.shape[-1]
    n_head = params["n_head"]
    d_head = hidden // n_head
    scale = float(d_head) ** -0.5
    dt = jnp.bfloat16

    # nn.Linear weight is (H_out, H_in): transpose once to (H_in, H_out) and
    # cast to bf16 so the MXU is fed natively. Fold the softmax scale into w_q/b_q.
    w_q = (params["w_q"].T * scale).astype(dt)
    b_q = (params["b_q"] * scale).astype(jnp.float32).reshape(1, hidden)
    w_k = params["w_k"].T.astype(dt)
    b_k = params["b_k"].astype(jnp.float32).reshape(1, hidden)
    w_v = params["w_v"].T.astype(dt)
    b_v = params["b_v"].astype(jnp.float32).reshape(1, hidden)
    w_o = params["w_o"].T.astype(dt)
    b_o = params["b_o"].astype(jnp.float32).reshape(1, hidden)

    if q is k and k is v:
        x = q.astype(dt)
        q_p, k_p, v_p = fused_qkv_projection(x, w_q, w_k, w_v, b_q, b_k, b_v)
    else:
        q_p = linear(q.astype(dt), w_q, b_q, out_dtype=dt)
        k_p = linear(k.astype(dt), w_k, b_k, out_dtype=dt)
        v_p = linear(v.astype(dt), w_v, b_v, out_dtype=dt)

    attn = flash_attention(q_p, k_p, v_p, n_head=n_head, d_head=d_head)  # (B, Lq, H) bf16
    return linear(attn, w_o, b_o, out_dtype=q.dtype)                     # (B, Lq, H)


# ----------------------------------------------------------------------------
# Pure-JAX reference (mirrors the PyTorch forward) for correctness checking.
# ----------------------------------------------------------------------------
def attention_layer_reference(params, q, k, v):
    hidden = q.shape[-1]
    n_head = params["n_head"]
    d_head = hidden // n_head
    b, lq, _ = q.shape
    lk = k.shape[1]

    def lin(x, w, bias):
        return x @ w.T + bias

    qp = lin(q, params["w_q"], params["b_q"]).reshape(b, lq, n_head, d_head).transpose(0, 2, 1, 3)
    kp = lin(k, params["w_k"], params["b_k"]).reshape(b, lk, n_head, d_head).transpose(0, 2, 1, 3)
    vp = lin(v, params["w_v"], params["b_v"]).reshape(b, lk, n_head, d_head).transpose(0, 2, 1, 3)
    scores = jnp.einsum("bhqd,bhkd->bhqk", qp, kp) * (d_head ** -0.5)
    attn = jax.nn.softmax(scores, axis=-1)
    out = jnp.einsum("bhqk,bhkd->bhqd", attn, vp)
    out = out.transpose(0, 2, 1, 3).reshape(b, lq, hidden)
    return lin(out, params["w_o"], params["b_o"])


def init_params(key, hidden_size, n_head):
    keys = jax.random.split(key, 8)
    scale = hidden_size ** -0.5
    return {
        "n_head": n_head,
        "w_q": jax.random.normal(keys[0], (hidden_size, hidden_size), jnp.float32) * scale,
        "b_q": jax.random.normal(keys[1], (hidden_size,), jnp.float32) * 0.01,
        "w_k": jax.random.normal(keys[2], (hidden_size, hidden_size), jnp.float32) * scale,
        "b_k": jax.random.normal(keys[3], (hidden_size,), jnp.float32) * 0.01,
        "w_v": jax.random.normal(keys[4], (hidden_size, hidden_size), jnp.float32) * scale,
        "b_v": jax.random.normal(keys[5], (hidden_size,), jnp.float32) * 0.01,
        "w_o": jax.random.normal(keys[6], (hidden_size, hidden_size), jnp.float32) * scale,
        "b_o": jax.random.normal(keys[7], (hidden_size,), jnp.float32) * 0.01,
    }


if __name__ == "__main__":
    hidden_size = 32
    n_head = 4
    batch = 2
    seq = 8

    key = jax.random.PRNGKey(0)
    k_param, k_q, k_k, k_v = jax.random.split(key, 4)

    params = init_params(k_param, hidden_size, n_head)
    q = jax.random.normal(k_q, (batch, seq, hidden_size), jnp.float32)
    k = jax.random.normal(k_k, (batch, seq, hidden_size), jnp.float32)
    v = jax.random.normal(k_v, (batch, seq, hidden_size), jnp.float32)

    # Cross-attention style call (distinct q / k / v): generic projection path.
    out = jax.block_until_ready(attention_layer_forward(params, q, k, v))
    ref = attention_layer_reference(params, q, k, v)
    assert out.shape == (batch, seq, hidden_size)
    # Tolerance covers bf16 matmul operands / bf16 intermediates (fp32 accumulation).
    assert jnp.allclose(out, ref, atol=5e-2, rtol=5e-2), "cross-attn mismatch vs reference"

    # Self-attention call (q is k is v): exercises the fused QKV projection.
    out_sa = jax.block_until_ready(attention_layer_forward(params, q, q, q))
    ref_sa = attention_layer_reference(params, q, q, q)
    assert jnp.allclose(out_sa, ref_sa, atol=5e-2, rtol=5e-2), "self-attn mismatch vs reference"

    print("KERNEL_OK")
</pallas_src>

<mosaic_0001>
module attributes {stable_mosaic.version = 11 : i64} {
  func.func @_linear_kernel(%arg0: i32, %arg1: i32, %arg2: i32, %arg3: i32, %arg4: memref<1x8x32xbf16, #tpu.memory_space<vmem>>, %arg5: memref<32x32xbf16, #tpu.memory_space<vmem>>, %arg6: memref<1x32xf32, #tpu.memory_space<vmem>>, %arg7: memref<1x8x32xbf16, #tpu.memory_space<vmem>>, %arg8: memref<8x32xf32, #tpu.memory_space<vmem>>) attributes {dimension_semantics = [#tpu.dimension_semantics<parallel>, #tpu.dimension_semantics<parallel>, #tpu.dimension_semantics<parallel>, #tpu.dimension_semantics<arbitrary>], iteration_bounds = array<i64: 2, 1, 1, 1>, scalar_prefetch = 0 : i64, scratch_operands = 1 : i64, tpu.core_type = #tpu.core_type<tc>, window_params = [{transform_indices = @transform_0, window_bounds = array<i64: 1, 8, 32>}, {transform_indices = @transform_1, window_bounds = array<i64: 32, 32>}, {transform_indices = @transform_2, window_bounds = array<i64: 1, 32>}, {transform_indices = @transform_3, window_bounds = array<i64: 1, 8, 32>}]} {
    %c0_i32 = arith.constant 0 : i32
    %0 = arith.cmpi eq, %arg3, %c0_i32 : i32
    %1 = arith.extui %0 : i1 to i32
    %c0_i32_0 = arith.constant 0 : i32
    %2 = arith.cmpi ne, %1, %c0_i32_0 : i32
    scf.if %2 {
      %cst_11 = arith.constant 0.000000e+00 : f32
      %13 = vector.broadcast %cst_11 : f32 to vector<8x32xf32>
      %c0_12 = arith.constant 0 : index
      %c0_13 = arith.constant 0 : index
      %14 = vector.load %arg8[%c0_12, %c0_13] : memref<8x32xf32, #tpu.memory_space<vmem>>, vector<8x32xf32>
      tpu.vector_store %arg8[%c0_12, %c0_13], %13 {strides = array<i32>} : memref<8x32xf32, #tpu.memory_space<vmem>>, vector<8x32xf32>,
    } else {
    }
    %c0 = arith.constant 0 : index
    %c0_1 = arith.constant 0 : index
    %3 = vector.load %arg8[%c0, %c0_1] : memref<8x32xf32, #tpu.memory_space<vmem>>, vector<8x32xf32>
    %c0_2 = arith.constant 0 : index
    %c0_3 = arith.constant 0 : index
    %c0_4 = arith.constant 0 : index
    %4 = vector.load %arg4[%c0_2, %c0_3, %c0_4] : memref<1x8x32xbf16, #tpu.memory_space<vmem>>, vector<1x8x32xbf16>
    %5 = vector.shape_cast %4 : vector<1x8x32xbf16> to vector<8x32xbf16>
    %c0_5 = arith.constant 0 : index
    %c0_6 = arith.constant 0 : index
    %6 = vector.load %arg5[%c0_5, %c0_6] : memref<32x32xbf16, #tpu.memory_space<vmem>>, vector<32x32xbf16>
    %cst = arith.constant dense<0.000000e+00> : vector<8x32xf32>
    %7 = tpu.matmul %5, %6, %cst {dimension_numbers = #tpu.dot_dimension_numbers<[1], [0], [0], [1], [0, 0, 1, 1], [], []>} : vector<8x32xbf16>, vector<32x32xbf16>, vector<8x32xf32> -> vector<8x32xf32>
    %8 = arith.addf %3, %7 : vector<8x32xf32>
    %c0_7 = arith.constant 0 : index
    %c0_8 = arith.constant 0 : index
    %9 = vector.load %arg8[%c0_7, %c0_8] : memref<8x32xf32, #tpu.memory_space<vmem>>, vector<8x32xf32>
    tpu.vector_store %arg8[%c0_7, %c0_8], %8 {strides = array<i32>} : memref<8x32xf32, #tpu.memory_space<vmem>>, vector<8x32xf32>,
    %c0_i32_9 = arith.constant 0 : i32
    %10 = arith.cmpi eq, %arg3, %c0_i32_9 : i32
    %11 = arith.extui %10 : i1 to i32
    %c0_i32_10 = arith.constant 0 : i32
    %12 = arith.cmpi ne, %11, %c0_i32_10 : i32
    scf.if %12 {
      %c0_11 = arith.constant 0 : index
      %c0_12 = arith.constant 0 : index
      %13 = vector.load %arg8[%c0_11, %c0_12] : memref<8x32xf32, #tpu.memory_space<vmem>>, vector<8x32xf32>
      %c0_13 = arith.constant 0 : index
      %c0_14 = arith.constant 0 : index
      %14 = vector.load %arg6[%c0_13, %c0_14] : memref<1x32xf32, #tpu.memory_space<vmem>>, vector<1x32xf32>
      %15 = vector.broadcast %14 : vector<1x32xf32> to vector<8x32xf32>
      %16 = arith.addf %13, %15 : vector<8x32xf32>
      %17 = arith.truncf %16 : vector<8x32xf32> to vector<8x32xbf16>
      %c0_15 = arith.constant 0 : index
      %c0_16 = arith.constant 0 : index
      %c0_17 = arith.constant 0 : index
      %18 = vector.load %arg7[%c0_15, %c0_16, %c0_17] : memref<1x8x32xbf16, #tpu.memory_space<vmem>>, vector<1x8x32xbf16>
      %19 = vector.shape_cast %18 : vector<1x8x32xbf16> to vector<8x32xbf16>
      %20 = vector.shape_cast %17 : vector<8x32xbf16> to vector<1x8x32xbf16>
      tpu.vector_store %arg7[%c0_15, %c0_16, %c0_17], %20 {strides = array<i32>} : memref<1x8x32xbf16, #tpu.memory_space<vmem>>, vector<1x8x32xbf16>,
    } else {
    }
    return
  }
  func.func @transform_0(%arg0: i32, %arg1: i32, %arg2: i32, %arg3: i32) -> (i32, i32, i32) {
    %c0_i32 = arith.constant 0 : i32
    return %arg0, %arg1, %arg3 : i32, i32, i32
  }
  func.func @transform_1(%arg0: i32, %arg1: i32, %arg2: i32, %arg3: i32) -> (i32, i32) {
    %c0_i32 = arith.constant 0 : i32
    return %arg3, %arg2 : i32, i32
  }
  func.func @transform_2(%arg0: i32, %arg1: i32, %arg2: i32, %arg3: i32) -> (i32, i32) {
    %c0_i32 = arith.constant 0 : i32
    %c0_i32_0 = arith.constant 0 : i32
    return %c0_i32, %arg2 : i32, i32
  }
  func.func @transform_3(%arg0: i32, %arg1: i32, %arg2: i32, %arg3: i32) -> (i32, i32, i32) {
    %c0_i32 = arith.constant 0 : i32
    return %arg0, %arg1, %arg2 : i32, i32, i32
  }
}

</mosaic_0001>

<bundles_post_ra>
// kernel: tpu_custom_call.1
= control target key start
LH: loop header
LB: loop body
LE: loop exit
PB: predicated region body
PF: predicated region fallthrough
CT: control target
= control target key end

     0   :  { %8 = vsyncpa [#allocation4], 0  ;;  %s986_s0 = inlined_call_operand.hbm [shape: bf16[2,8,32], index: 0, kind: input, shape index: {}]   ;;  %s987_s1 = inlined_call_operand.hbm [shape: bf16[32,32], index: 1, kind: input, shape index: {}]   ;;  %s988_s2 = inlined_call_operand.vmem [shape: f32[1,32], index: 2, kind: input, shape index: {}]   ;;  %s989_s3 = inlined_call_operand.hbm [shape: bf16[2,8,32], index: 3, kind: output, shape index: {}]  }
   0x1   :  { %10 = vsyncpa [#allocation4 + $0x1], 0 }
   0x2   :  { %11 = vsyncpa [#allocation7], 0 }
   0x3   :  { %12 = vsyncpa [#allocation5], 0 }
   0x4   :  { %14 = vsyncpa [#allocation5 + $0x1], 0  ;;  %s762_s12 = smov 0   ;;  %s764_s13 = smov 0  }
   0x5   :  { %s766_s14 = smov 0   ;;  %s768_s15 = smov 0  }
   0x6   :  { %s770_s16 = smov 0   ;;  %s772_s17 = smov 0  }
   0x7 LB: > { %s479_s18 = sadd.s32 4294967295, %s733_s17   ;;  %s480_s19 = sadd.s32 4294967294, %s733_s17   ;;  %s733_s17 = sphi %s772_s17, %s20_s17   ;;  %s729_s16 = sphi %s770_s16, %s1013_s16   ;;  %s725_s15 = sphi %s768_s15, %s1012_s15   ;;  %s721_s14 = sphi %s766_s14, %s1011_s14   ;;  %s717_s13 = sphi %s764_s13, %s1010_s13   ;;  %s713_s12 = sphi %s762_s12, %s1009_s12  }
   0x8   : > { %p70_p0 = scmp.ne.s32.totalorder %s717_s13, %s713_s12  ;;  %p796_p1 = scmp.eq.s32.totalorder %s479_s18, 0 }
   0x9   : > { %p800_p2 = scmp.eq.s32.totalorder %s479_s18, 1  ;;  %p158_p3 = scmp.eq.s32.totalorder %s480_s19, 1 }
   0xa   : > { %s994_s20 = scalar_select %p796_p1, 1, 0 }
   0xb   : > { %s995_s21 = scalar_select %p800_p2, 1, 0 }
   0xc   : > { %p806_p4 = por %p796_p1, %p70_p0  ;;  %p481_p5 = scmp.ge.s32.totalorder %s733_s17, 1 }
   0xd   : > { %p811_p6 = por %p158_p3, %p70_p0  ;;  %p165_p7 = scmp.lt.s32.totalorder %s733_s17, 3 }
   0xe   : > { %s996_s22 = scalar_select %p806_p4, 1, 0 }
   0xf   : > { %s997_s23 = scalar_select %p811_p6, 1, 0 }
  0x10   : > { %p816_p8 = pnand %p481_p5, %p165_p7  ;;  %s735_s25 = smov [#allocation6]  }
  0x11   : > { %s181_s26 = sshll.u32 %s735_s25, 4  ;;  %s46_s28 = sadd.s32 1, %s729_s16  ;;  %s182_s26 = int_to_ptr.vmem [resolvable:$true] %s181_s26 }
  0x12   : > { %s998_s24 = scalar_select %p816_p8, 1, 0 }
  0x13   : > { %p518_p9 = pneg %p816_p8  ;;  %s589_s4 = scalar_lea.hbm %s987_s1, 256 }
  0x14   : > { %p590_p12 = scmp.ne.s32.totalorder %s987_s1, %s589_s4  ;;  %p596_p5 = scmp.lt.u32.totalorder %s589_s4, %s987_s1 }
  0x15   : > { %p825_p11 = pnand %p518_p9, %p796_p1 }
  0x17   : > { %p591_p13 = pneg %p825_p11 }
  0x19   : > { %p592_p0 = pnand %p591_p13, %p590_p12 }
  0x1b   : > { %p593_p3 = pneg %p592_p0 }
  0x1d   : > { %p598_p7 = pnand %p596_p5, %p593_p3 }
  0x1f   : > { %601 = shalt.err (!%p598_p7)
}
  0x20   : > { %s602_s9 = scalar_lea.vmem %s182_s26, 256  ;;  %p610_p1 = scmp.lt.s32.totalorder %s182_s26, %s182_s26 }
  0x21   : > { %p603_p9 = scmp.ne.s32.totalorder %s182_s26, %s602_s9  ;;  %p611_p4 = scmp.lt.s32.totalorder %s602_s9, %s602_s9 }
  0x23   : > { %p605_p10 = pnand %p603_p9, %p591_p13  ;;  %p612_p8 = por %p611_p4, %p610_p1 }
  0x25   : > { %p606_p6 = pneg %p605_p10 }
  0x27   : > { %p613_p2 = pnand %p612_p8, %p606_p6 }
  0x29   : > { %616 = shalt.err (!%p613_p2)
}
  0x2a   : > { %s736_s10 = smov 64   ;;  %s737_s11 = smov 4  }
  0x2b   : > { %521 = dma.hbm_to_vmem [thread:$0]  (!%p825_p11), %s987_s1, 256, %s182_s26, [#allocation7], %s736_s10, %s736_s10, %s737_s11  }
  0x2c   : > { %p48_p1 = scmp.ge.s32.totalorder %s46_s28, 2  ;;  %s57_s25 = sadd.s32 1, %s721_s14 }
  0x2d   : > { %p64_p2 = scmp.ne.s32.totalorder %s721_s14, %s717_s13  ;;  %p65_p4 = scmp.eq.s32.totalorder %s733_s17, 0 }
  0x2e   : > { %s1015_s28 = smov (%p48_p1, %s46_s28), 0  ;;  %p1001_p8 = scmp.ne.s32.totalorder %s995_s21, 0 }
  0x2f   : > { %p852_p6 = por %p65_p4, %p64_p2  ;;  %s50_s27 = ssub.s32 %s729_s16, %s1015_s28 }
  0x30   : > { %p858_p10 = por %p1001_p8, %p64_p2  ;;  %p531_p12 = scmp.lt.s32.totalorder %s733_s17, 2 }
  0x31   : > { %p55_p11 = scmp.eq.s32.totalorder %s50_s27, 0  ;;  %s201_s26 = sand.u32 1, %s721_s14  }
  0x32   : > { %s485_s4 = sshll.u32 %s201_s26, 2  ;;  %s486_s6 = sshll.u32 %s729_s16, 6 }
  0x33   : > { %s867_s5 = scalar_select %p55_p11, %s721_s14, %s57_s25  }
  0x34   : > { %s873_s9 = scalar_lea.hbm %s986_s0, %s486_s6  ;;  %s205_s21 = scalar_lea.vmem [#allocation3], %s485_s4 }
  0x35   : > { %s214_s10 = sshll.u32 %s205_s21, 4  ;;  %p879_p13 = pnand %p531_p12, %p852_p6  ;;  %s875_s10 = int_to_ptr.vmem [resolvable:$true] %s214_s10 }
  0x36   : > { %s202_s18 = scalar_lea.sflag [#allocation4], %s201_s26  ;;  %s617_s19 = scalar_lea.hbm %s873_s9, 64 }
  0x37   : > { %p618_p0 = scmp.ne.s32.totalorder %s873_s9, %s617_s19  ;;  %p619_p3 = pneg %p879_p13 }
  0x38   : > { %s622_s4 = scalar_lea.hbm %s986_s0, 128  ;;  %p623_p9 = scmp.lt.u32.totalorder %s873_s9, %s986_s0 }
  0x39   : > { %p620_p5 = pnand %p619_p3, %p618_p0  ;;  %p624_p1 = scmp.lt.u32.totalorder %s622_s4, %s617_s19 }
  0x3a   : > { %p626_p4 = scmp.lt.u32.totalorder %s617_s19, %s873_s9 }
  0x3b   : > { %p621_p7 = pneg %p620_p5  ;;  %p625_p2 = por %p624_p1, %p623_p9 }
  0x3d   : > { %p627_p6 = por %p626_p4, %p625_p2 }
  0x3f   : > { %p628_p8 = pnand %p627_p6, %p621_p7 }
  0x41   : > { %631 = shalt.err (!%p628_p8)
}
  0x42   : > { %s632_s26 = scalar_lea.vmem %s875_s10, 64  ;;  %s738_s7 = smov [#allocation3]  }
  0x43   : > { %p633_p12 = scmp.ne.s32.totalorder %s875_s10, %s632_s26  ;;  %s637_s8 = sshll.u32 %s738_s7, 4  ;;  %s638_s8 = int_to_ptr.vmem [resolvable:$false] %s637_s8 }
  0x44   : > { %s639_s21 = scalar_lea.vmem %s638_s8, 128  ;;  %p640_p5 = scmp.lt.s32.totalorder %s875_s10, %s638_s8 }
  0x45   : > { %p635_p11 = pnand %p633_p12, %p619_p3  ;;  %p641_p9 = scmp.lt.s32.totalorder %s639_s21, %s632_s26 }
  0x47   : > { %p636_p0 = pneg %p635_p11  ;;  %p642_p1 = por %p641_p9, %p640_p5 }
  0x49   : > { %p643_p2 = pnand %p642_p1, %p636_p0 }
  0x4b   : > { %646 = shalt.err (!%p643_p2)
}
  0x4c   : > { %525 = dma.hbm_to_vmem [thread:$0]  (!%p879_p13), %s873_s9, 64, %s875_s10, %s202_s18  }
  0x4d   : > { %p1004_p7 = scmp.ne.s32.totalorder %s998_s24, 0 }
  0x4e   : > { %s911_s19 = sand.u32 (!%p1004_p7), 1, %s717_s13   ;;  %p1005_p3 = scmp.ne.s32.totalorder (!%p1004_p7), %s996_s22, 0 }
  0x4f   : > { %223 = sbr.rel (%p1004_p7) target bundleno = 339 (0x153), region = 32  ;;  %s488_s25 = sshll.u32 (!%p1004_p7), %s911_s19, 2 }
  0x50   : > { %s226_s27 = scalar_lea.sflag (!%p1004_p7), [#allocation4], %s911_s19  ;;  %s229_s4 = scalar_lea.vmem (!%p1004_p7), [#allocation3], %s488_s25 }
  0x56   : > { %700 = dma.done.wait (%p1005_p3), %s226_s27, 64  }
  0x57   : > { %702 = vsyncadd (%p1005_p3), %s226_s27, 4294967232  ;;  %p1006_p13 = scmp.ne.s32.totalorder %s994_s20, 0 }
  0x59   : > { %704 = dma.done.wait (%p1006_p13), [#allocation7], 256  }
  0x5a   : > { %706 = vsyncadd (%p1006_p13), [#allocation7], 4294967040  ;;  %vm268_vm0 = vcmask 261120   ;;  %v739_v0 = vmov 0.0   ;;  %vm740_vm1 = vmmov 0   ;;  %v587_v1 = vld [vmem:[#allocation6] sm:$0xff]  }
  0x5b   : > { %502 = vmatprep.subr.bf16.mxu0 %v739_v0  ;;  %506 = vmatprep.mubr.msk.bf16.mxu0 %vm740_vm1, %v739_v0  ;;  %269 = vst.msk [vmem:[#allocation2] sm:$0xff] %vm268_vm0, %v739_v0  ;;  %v588_v2 = vld [vmem:[#allocation6 + $0x8] sm:$0xff]   ;;  %v271_v3 = vld [vmem:[%s229_s4] sm:$0xf]  ;;  %v494_v10 = vld [vmem:[%s988_s2] ss:$0 sm:$0xff] }
  0x5c   : > { %503 = vmatpush3.bf16.msra.mxu0 %v587_v1  ;;  %s496_s24 = sshll.u32 %s725_s15, 6  ;;  %s258_s9 = scalar_lea.vmem [#allocation8], %s488_s25  ;;  %vm347_vm2 = vcmask 257024  }
  0x5d   : > { %504 = vmatprep.subr.bf16.mxu0 %v739_v0  ;;  %s365_s10 = sshll.u32 %s258_s9, 4  ;;  %s937_s29 = scalar_lea.hbm %s989_s3, %s496_s24  ;;  %s939_s10 = int_to_ptr.vmem [resolvable:$true] %s365_s10 }
  0x5e   : > { %s350_s6 = scalar_lea.sflag [#allocation5], %s911_s19  ;;  %s647_s26 = scalar_lea.vmem %s939_s10, 64 }
  0x5f   : > { %p648_p4 = scmp.ne.s32.totalorder %s939_s10, %s647_s26  ;;  %s741_s15 = smov [#allocation8]  }
  0x60   : > { %505 = vmatpush3.bf16.msra.mxu0 %v588_v2  ;;  %s651_s7 = sshll.u32 %s741_s15, 4  ;;  %s652_s7 = int_to_ptr.vmem [resolvable:$false] %s651_s7 }
  0x61   : > { %p649_p6 = pnand %p648_p4, %p858_p10  ;;  %s653_s8 = scalar_lea.vmem %s652_s7, 128 }
  0x62   : > { %v270_v4 = vld [vmem:[#allocation2] sm:$0xff]  ;;  %p654_p12 = scmp.lt.s32.totalorder %s939_s10, %s652_s7  ;;  %p655_p11 = scmp.lt.s32.totalorder %s653_s8, %s647_s26 }
  0x63   : > { %507 = vmatmul.mubr.msk.bf16.vlgmr.msra.gmra.mrb[0].mxu0 %vm268_vm0, %v271_v3  ;;  %p650_p8 = pneg %p649_p6 }
  0x64   : > { %p656_p0 = por %p655_p11, %p654_p12 }
  0x66   : > { %p657_p5 = pnand %p656_p0, %p650_p8 }
 0x136   : > { %v326_v5 = vpop.f32.mrb[0].mxu0 }
 0x137   : > { %v332_v6 = vadd.f32 %v326_v5, %v270_v4  ;;  %v508_v7 = vpop.f32.mrb[1].mxu0 }
 0x138   : > { %v329_v8 = vpop.f32.mrb[2].mxu0 }
 0x139   : > { %333 = vst.msk [vmem:[#allocation2] sm:$0xff] %vm268_vm0, %v332_v6  ;;  %v509_v9 = vpop.f32.mrb[3].mxu0 }
 0x140   : > { %v337_v11 = vld [vmem:[#allocation2] sm:$0xff] }
 0x141   : > { %v345_v12 = vadd.f32 %v494_v10, %v337_v11 }
 0x143   : > { %v346_v13 = vpack.c.bf16 %v345_v12, %v345_v12 }
 0x145   : > { %348 = vst.msk [vmem:[%s258_s9] sm:$0xf] %vm347_vm2, %v346_v13 }
 0x146   : > { %660 = shalt.err (!%p657_p5)
}
 0x147   : > { %s661_s21 = scalar_lea.hbm %s937_s29, 64  ;;  %s665_s27 = scalar_lea.hbm %s989_s3, 128 }
 0x148   : > { %p662_p9 = scmp.ne.s32.totalorder %s937_s29, %s661_s21  ;;  %p666_p7 = scmp.lt.u32.totalorder %s937_s29, %s989_s3 }
 0x149   : > { %p667_p3 = scmp.lt.u32.totalorder %s665_s27, %s661_s21  ;;  %p669_p4 = scmp.lt.u32.totalorder %s661_s21, %s937_s29 }
 0x14a   : > { %p663_p1 = pnand %p662_p9, %p858_p10 }
 0x14b   : > { %p668_p13 = por %p667_p3, %p666_p7 }
 0x14c   : > { %p664_p2 = pneg %p663_p1 }
 0x14d   : > { %p670_p6 = por %p669_p4, %p668_p13 }
 0x14f   : > { %p671_p8 = pnand %p670_p6, %p664_p2 }
 0x151   : > { %674 = shalt.err (!%p671_p8)
}
 0x152   : > { %516 = dma.vmem_to_hbm [thread:$0]  (%p858_p10), %s939_s10, 64, %s937_s29, %s350_s6  }
 0x153 PF: > { %s377_s22 = sand.u32 1, %s713_s12   ;;  %p1007_p12 = scmp.ne.s32.totalorder %s997_s23, 0 }
 0x154   : > { %p1008_p11 = scmp.ge.s32.totalorder %s733_s17, 2  ;;  %s378_s24 = scalar_lea.sflag [#allocation5], %s377_s22 }
 0x156   : > { %p527_p0 = pnand %p1008_p11, %p1007_p12 }
 0x158   : > { %708 = dma.done.wait (!%p527_p0), %s378_s24, 64  }
 0x159   : > { %710 = vsyncadd (!%p527_p0), %s378_s24, 4294967232  ;;  %s20_s17 = sadd.s32 1, %s733_s17   ;;  %s1009_s12 = smov %s717_s13 }
 0x15a   : > { %p17_p5 = scmp.ge.s32.totalorder %s20_s17, 4   ;;  %s1010_s13 = smov %s721_s14 }
 0x15b   : > { %s1011_s14 = smov %s867_s5  ;;  %s1012_s15 = smov %s729_s16 }
 0x15c   : > { %s1013_s16 = smov %s1015_s28  ;;  %19 = sbr.rel (!%p17_p5) target bundleno = 7 (0x7), region = 93 }
 0x163   :  { %383 = vsyncpa [#allocation4], 1 }
 0x164   :  { %385 = vsyncpa [#allocation4 + $0x1], 1 }
 0x165   :  { %386 = vsyncpa [#allocation7], 1 }
 0x166   :  { %387 = vsyncpa [#allocation5], 1 }
 0x167   :  { %389 = vsyncpa [#allocation5 + $0x1], 1 }

</bundles_post_ra>
